<compile_context>
chip_gen: v7x
topology: tpu7x:2x2x1
jax: 0.10.0
libtpu: 0.0.40
codegen_flags: <defaults>
</compile_context>

<pallas_src>
import functools

import jax
import jax.numpy as jnp
from jax.experimental import pallas as pl
from jax.experimental.pallas import tpu as pltpu


# ----------------------------------------------------------------------------
# Kernel: entire recurrence in one invocation
# ----------------------------------------------------------------------------
def pggru_kernel(
    x2d_ref,     # (S*Bp, I)   all time steps, time-major, batch-padded rows
    w_in_ref,    # (I, 2*Hp)   [W_zx | W_cx]   (zero-padded columns)
    b_in_ref,    # (1, 2*Hp)   [b_z  | b_c]
    w_h_ref,     # (Hp, 2*Hp)  [W_zh | W_ch]   (zero-padded rows/columns)
    tresh_ref,   # (1, Hp)     LinearGated threshold
    decay_ref,   # (1, Hp)     LinearGated decay rate
    wfc_ref,     # (Hp, Op)    fc_out weight
    bfc_ref,     # (1, Op)     fc_out bias
    out_ref,     # (Bp, Op)    fc_out(h_final)
    xproj_ref,   # VMEM scratch (S*Bp, 2*Hp)
    *, seq_len, batch_pad, hidden_pad,
):
    # ---- prologue (off the serial path): all S input projections in a single
    # MXU op, parked in VMEM scratch so the (S*Bp, 2Hp) slab never stays live
    # in vregs across the recurrence.
    xproj_ref[...] = (
        jnp.dot(x2d_ref[...], w_in_ref[...], preferred_element_type=jnp.float32)
        + b_in_ref[...]
    )

    # ---- loop invariants hoisted once.
    w_h = w_h_ref[...]                                               # (Hp, 2Hp)
    tresh = jnp.broadcast_to(tresh_ref[...], (batch_pad, hidden_pad))
    decay = jnp.broadcast_to(decay_ref[...], (batch_pad, hidden_pad))

    h = jnp.zeros((batch_pad, hidden_pad), jnp.float32)
    pot = jnp.zeros((batch_pad, hidden_pad), jnp.float32)

    # ---- time recurrence.  S is tiny here, so straight-line unroll (full LLO
    # visibility); per-step x_t is an aligned vld from the VMEM scratch.
    for t in range(seq_len):
        x_t = xproj_ref[pl.ds(t * batch_pad, batch_pad), :]         # (Bp, 2Hp)
        pre = x_t + jnp.dot(h, w_h, preferred_element_type=jnp.float32)
        z_l = pre[:, :hidden_pad]                                   # 128-lane tile
        n_l = pre[:, hidden_pad:]

        # LinearGated (update gate): potential += z_l; fire where pot > tresh;
        # fired -> output potential & reset; not fired -> keep & decay.
        pot = pot + z_l
        fired = pot > tresh
        z = jnp.where(fired, pot, 0.0)
        pot = jnp.where(fired, 0.0, pot) * decay

        # candidate hidden state + GRU-style blend (== z*h + (1-z)*n).
        n = jnp.tanh(n_l)                                           # EUP slot
        h = n + z * (h - n)

    # ---- epilogue: fused fc_out, lane-dense (Bp, Op) store.
    out_ref[...] = (
        jnp.dot(h, wfc_ref[...], preferred_element_type=jnp.float32)
        + bfc_ref[...]
    )


# ----------------------------------------------------------------------------
# Wrapper
# ----------------------------------------------------------------------------
def _round_up(n, m):
    return ((n + m - 1) // m) * m


def _pad_cols(a, cols):
    return jnp.pad(a, ((0, 0), (0, cols - a.shape[1])))


def _pad_2d(a, rows, cols):
    return jnp.pad(a, ((0, rows - a.shape[0]), (0, cols - a.shape[1])))


@jax.jit
def pggru_net_forward(data, params):
    """data: (S, B, I) float32.  Returns (B, O) float32."""
    S, B, I = data.shape
    H = params["wzh"].shape[0]
    O = params["wfc"].shape[1]

    # Hardware-aligned padded sizes: batch -> sublane multiple (8),
    # hidden / output -> lane multiples (128).
    Bp = _round_up(B, 8)
    Hp = _round_up(H, 128)
    Op = _round_up(O, 128)

    # Fuse + zero-pad weights once outside the kernel.  Padded rows/cols are
    # zero, so padded lanes of h / pot stay exactly 0 through the recurrence
    # and padded batch rows never contaminate real rows.
    w_in = jnp.concatenate(
        [_pad_cols(params["wzx"], Hp), _pad_cols(params["wcx"], Hp)], axis=1)
    b_in = jnp.concatenate(
        [_pad_cols(params["bz"], Hp), _pad_cols(params["bc"], Hp)], axis=1)
    w_h = jnp.concatenate(
        [_pad_2d(params["wzh"], Hp, Hp), _pad_2d(params["wch"], Hp, Hp)], axis=1)
    tresh = _pad_cols(params["tresh"], Hp)
    decay = _pad_cols(params["decay"], Hp)
    wfc = _pad_2d(params["wfc"], Hp, Op)
    bfc = _pad_cols(params["bfc"], Op)

    data2d = jnp.pad(data, ((0, 0), (0, Bp - B), (0, 0))).reshape(S * Bp, I)

    out_padded = pl.pallas_call(
        functools.partial(pggru_kernel, seq_len=S, batch_pad=Bp, hidden_pad=Hp),
        out_shape=jax.ShapeDtypeStruct((Bp, Op), jnp.float32),
        # Single invocation, no grid: every operand is tiny and brought whole
        # into VMEM; the only scratch is the (S*Bp, 2Hp) projection buffer.
        scratch_shapes=[pltpu.VMEM((S * Bp, 2 * Hp), jnp.float32)],
    )(data2d, w_in, b_in, w_h, tresh, decay, wfc, bfc)

    return out_padded[:B, :O]


# ----------------------------------------------------------------------------
# Pure-JAX reference (mirrors the PyTorch forward exactly, full f32 matmuls)
# ----------------------------------------------------------------------------
def pggru_net_reference(data, params):
    S, B, I = data.shape
    H = params["wzh"].shape[0]
    hi = jax.lax.Precision.HIGHEST
    h = jnp.zeros((B, H), jnp.float32)
    pot = jnp.zeros((B, H), jnp.float32)
    for t in range(S):
        x = data[t]
        z_l = (jnp.dot(x, params["wzx"], precision=hi)
               + jnp.dot(h, params["wzh"], precision=hi) + params["bz"])
        p = pot + z_l
        gated = jnp.maximum(p - params["tresh"], 0.0)
        gb = (gated > 0.0).astype(jnp.float32)
        z = gb * p
        pot = p * (1.0 - gb) * params["decay"]
        n = jnp.tanh(jnp.dot(x, params["wcx"], precision=hi)
                     + jnp.dot(h, params["wch"], precision=hi) + params["bc"])
        h = z * h + (1.0 - z) * n
    return jnp.dot(h, params["wfc"], precision=hi) + params["bfc"]


# ----------------------------------------------------------------------------
# Deterministic parameter init (shapes follow the nn.Module __init__)
# ----------------------------------------------------------------------------
def init_params(key, input_size, hidden_size, output_size):
    ks = jax.random.split(key, 8)

    def lin(kw, kb, fan_in, shape_w, shape_b):
        bound = 1.0 / jnp.sqrt(fan_in)
        w = jax.random.uniform(kw, shape_w, jnp.float32, -bound, bound)
        b = jax.random.uniform(kb, shape_b, jnp.float32, -bound, bound)
        return w, b

    # W_z : Linear(input+hidden, hidden) -> split into x-part (I,H) and h-part (H,H)
    wz, bz = lin(ks[0], ks[1], input_size + hidden_size,
                 (input_size + hidden_size, hidden_size), (1, hidden_size))
    wc, bc = lin(ks[2], ks[3], input_size + hidden_size,
                 (input_size + hidden_size, hidden_size), (1, hidden_size))
    wfc, bfc = lin(ks[4], ks[5], hidden_size,
                   (hidden_size, output_size), (1, output_size))

    # scaled_bell_distribution_capped_at_2_times_sigma(width, mean, sigma)
    tresh = jnp.clip(0.3 + 0.05 * jax.random.normal(ks[6], (1, hidden_size)),
                     0.3 - 0.1, 0.3 + 0.1).astype(jnp.float32)
    decay = jnp.clip(0.7 + 0.10 * jax.random.normal(ks[7], (1, hidden_size)),
                     0.7 - 0.2, 0.7 + 0.2).astype(jnp.float32)

    return {
        "wzx": wz[:input_size], "wzh": wz[input_size:], "bz": bz,
        "wcx": wc[:input_size], "wch": wc[input_size:], "bc": bc,
        "tresh": tresh, "decay": decay,
        "wfc": wfc, "bfc": bfc,
    }


if __name__ == "__main__":
    SEQ, BATCH, INPUT, HIDDEN, OUTPUT = 8, 4, 8, 32, 4

    key = jax.random.PRNGKey(0)
    k_data, k_params = jax.random.split(key)
    data = jax.random.normal(k_data, (SEQ, BATCH, INPUT), jnp.float32)
    params = init_params(k_params, INPUT, HIDDEN, OUTPUT)

    out = pggru_net_forward(data, params)
    out = jax.block_until_ready(out)

    ref = pggru_net_reference(data, params)
    assert out.shape == (BATCH, OUTPUT)
    err = jnp.max(jnp.abs(out - ref))
    assert jnp.allclose(out, ref, rtol=1e-4, atol=1e-4), f"mismatch vs reference: {err:.3e}"

    print("KERNEL_OK")
</pallas_src>

<mosaic_0001>
module attributes {stable_mosaic.version = 11 : i64} {
  func.func @pggru_kernel(%arg0: memref<64x8xf32, #tpu.memory_space<vmem>>, %arg1: memref<8x256xf32, #tpu.memory_space<vmem>>, %arg2: memref<1x256xf32, #tpu.memory_space<vmem>>, %arg3: memref<128x256xf32, #tpu.memory_space<vmem>>, %arg4: memref<1x128xf32, #tpu.memory_space<vmem>>, %arg5: memref<1x128xf32, #tpu.memory_space<vmem>>, %arg6: memref<128x128xf32, #tpu.memory_space<vmem>>, %arg7: memref<1x128xf32, #tpu.memory_space<vmem>>, %arg8: memref<8x128xf32, #tpu.memory_space<vmem>>, %arg9: memref<64x256xf32, #tpu.memory_space<vmem>>) attributes {dimension_semantics = [], scalar_prefetch = 0 : i64, scratch_operands = 1 : i64, tpu.core_type = #tpu.core_type<tc>} {
    %c0 = arith.constant 0 : index
    %c0_0 = arith.constant 0 : index
    %0 = vector.load %arg0[%c0, %c0_0] : memref<64x8xf32, #tpu.memory_space<vmem>>, vector<64x8xf32>
    %c0_1 = arith.constant 0 : index
    %c0_2 = arith.constant 0 : index
    %1 = vector.load %arg1[%c0_1, %c0_2] : memref<8x256xf32, #tpu.memory_space<vmem>>, vector<8x256xf32>
    %cst = arith.constant dense<0.000000e+00> : vector<64x256xf32>
    %2 = tpu.matmul %0, %1, %cst {dimension_numbers = #tpu.dot_dimension_numbers<[1], [0], [0], [1], [0, 0, 1, 1], [], []>} : vector<64x8xf32>, vector<8x256xf32>, vector<64x256xf32> -> vector<64x256xf32>
    %c0_3 = arith.constant 0 : index
    %c0_4 = arith.constant 0 : index
    %3 = vector.load %arg2[%c0_3, %c0_4] : memref<1x256xf32, #tpu.memory_space<vmem>>, vector<1x256xf32>
    %4 = vector.broadcast %3 : vector<1x256xf32> to vector<64x256xf32>
    %5 = arith.addf %2, %4 : vector<64x256xf32>
    %c0_5 = arith.constant 0 : index
    %c0_6 = arith.constant 0 : index
    %6 = vector.load %arg9[%c0_5, %c0_6] : memref<64x256xf32, #tpu.memory_space<vmem>>, vector<64x256xf32>
    tpu.vector_store %arg9[%c0_5, %c0_6], %5 {strides = array<i32>} : memref<64x256xf32, #tpu.memory_space<vmem>>, vector<64x256xf32>,
    %c0_7 = arith.constant 0 : index
    %c0_8 = arith.constant 0 : index
    %7 = vector.load %arg3[%c0_7, %c0_8] : memref<128x256xf32, #tpu.memory_space<vmem>>, vector<128x256xf32>
    %c0_9 = arith.constant 0 : index
    %c0_10 = arith.constant 0 : index
    %8 = vector.load %arg4[%c0_9, %c0_10] : memref<1x128xf32, #tpu.memory_space<vmem>>, vector<1x128xf32>
    %9 = vector.shape_cast %8 : vector<1x128xf32> to vector<1x128xf32>
    %10 = vector.broadcast %9 : vector<1x128xf32> to vector<8x128xf32>
    %c0_11 = arith.constant 0 : index
    %c0_12 = arith.constant 0 : index
    %11 = vector.load %arg5[%c0_11, %c0_12] : memref<1x128xf32, #tpu.memory_space<vmem>>, vector<1x128xf32>
    %12 = vector.shape_cast %11 : vector<1x128xf32> to vector<1x128xf32>
    %13 = vector.broadcast %12 : vector<1x128xf32> to vector<8x128xf32>
    %cst_13 = arith.constant 0.000000e+00 : f32
    %14 = vector.broadcast %cst_13 : f32 to vector<8x128xf32>
    %cst_14 = arith.constant 0.000000e+00 : f32
    %15 = vector.broadcast %cst_14 : f32 to vector<8x128xf32>
    %c0_15 = arith.constant 0 : index
    %c0_16 = arith.constant 0 : index
    %16 = vector.load %arg9[%c0_15, %c0_16] : memref<64x256xf32, #tpu.memory_space<vmem>>, vector<8x256xf32>
    %cst_17 = arith.constant dense<0.000000e+00> : vector<8x256xf32>
    %17 = tpu.matmul %14, %7, %cst_17 {dimension_numbers = #tpu.dot_dimension_numbers<[1], [0], [0], [1], [0, 0, 1, 1], [], []>} : vector<8x128xf32>, vector<128x256xf32>, vector<8x256xf32> -> vector<8x256xf32>
    %18 = arith.addf %16, %17 : vector<8x256xf32>
    %19 = vector.extract_strided_slice %18 {offsets = [0, 0], sizes = [8, 128], strides = [1, 1]} : vector<8x256xf32> to vector<8x128xf32>
    %20 = vector.extract_strided_slice %18 {offsets = [0, 128], sizes = [8, 128], strides = [1, 1]} : vector<8x256xf32> to vector<8x128xf32>
    %21 = arith.addf %15, %19 : vector<8x128xf32>
    %22 = arith.cmpf ogt, %21, %10 : vector<8x128xf32>
    %cst_18 = arith.constant 0.000000e+00 : f32
    %23 = vector.broadcast %cst_18 : f32 to vector<8x128xf32>
    %24 = arith.select %22, %21, %23 : vector<8x128xi1>, vector<8x128xf32>
    %cst_19 = arith.constant 0.000000e+00 : f32
    %25 = vector.broadcast %cst_19 : f32 to vector<8x128xf32>
    %26 = arith.select %22, %25, %21 : vector<8x128xi1>, vector<8x128xf32>
    %27 = arith.mulf %26, %13 : vector<8x128xf32>
    %28 = math.tanh %20 : vector<8x128xf32>
    %29 = arith.subf %14, %28 : vector<8x128xf32>
    %30 = arith.mulf %24, %29 : vector<8x128xf32>
    %31 = arith.addf %28, %30 : vector<8x128xf32>
    %c8 = arith.constant 8 : index
    %c0_20 = arith.constant 0 : index
    %32 = vector.load %arg9[%c8, %c0_20] : memref<64x256xf32, #tpu.memory_space<vmem>>, vector<8x256xf32>
    %cst_21 = arith.constant dense<0.000000e+00> : vector<8x256xf32>
    %33 = tpu.matmul %31, %7, %cst_21 {dimension_numbers = #tpu.dot_dimension_numbers<[1], [0], [0], [1], [0, 0, 1, 1], [], []>} : vector<8x128xf32>, vector<128x256xf32>, vector<8x256xf32> -> vector<8x256xf32>
    %34 = arith.addf %32, %33 : vector<8x256xf32>
    %35 = vector.extract_strided_slice %34 {offsets = [0, 0], sizes = [8, 128], strides = [1, 1]} : vector<8x256xf32> to vector<8x128xf32>
    %36 = vector.extract_strided_slice %34 {offsets = [0, 128], sizes = [8, 128], strides = [1, 1]} : vector<8x256xf32> to vector<8x128xf32>
    %37 = arith.addf %27, %35 : vector<8x128xf32>
    %38 = arith.cmpf ogt, %37, %10 : vector<8x128xf32>
    %cst_22 = arith.constant 0.000000e+00 : f32
    %39 = vector.broadcast %cst_22 : f32 to vector<8x128xf32>
    %40 = arith.select %38, %37, %39 : vector<8x128xi1>, vector<8x128xf32>
    %cst_23 = arith.constant 0.000000e+00 : f32
    %41 = vector.broadcast %cst_23 : f32 to vector<8x128xf32>
    %42 = arith.select %38, %41, %37 : vector<8x128xi1>, vector<8x128xf32>
    %43 = arith.mulf %42, %13 : vector<8x128xf32>
    %44 = math.tanh %36 : vector<8x128xf32>
    %45 = arith.subf %31, %44 : vector<8x128xf32>
    %46 = arith.mulf %40, %45 : vector<8x128xf32>
    %47 = arith.addf %44, %46 : vector<8x128xf32>
    %c16 = arith.constant 16 : index
    %c0_24 = arith.constant 0 : index
    %48 = vector.load %arg9[%c16, %c0_24] : memref<64x256xf32, #tpu.memory_space<vmem>>, vector<8x256xf32>
    %cst_25 = arith.constant dense<0.000000e+00> : vector<8x256xf32>
    %49 = tpu.matmul %47, %7, %cst_25 {dimension_numbers = #tpu.dot_dimension_numbers<[1], [0], [0], [1], [0, 0, 1, 1], [], []>} : vector<8x128xf32>, vector<128x256xf32>, vector<8x256xf32> -> vector<8x256xf32>
    %50 = arith.addf %48, %49 : vector<8x256xf32>
    %51 = vector.extract_strided_slice %50 {offsets = [0, 0], sizes = [8, 128], strides = [1, 1]} : vector<8x256xf32> to vector<8x128xf32>
    %52 = vector.extract_strided_slice %50 {offsets = [0, 128], sizes = [8, 128], strides = [1, 1]} : vector<8x256xf32> to vector<8x128xf32>
    %53 = arith.addf %43, %51 : vector<8x128xf32>
    %54 = arith.cmpf ogt, %53, %10 : vector<8x128xf32>
    %cst_26 = arith.constant 0.000000e+00 : f32
    %55 = vector.broadcast %cst_26 : f32 to vector<8x128xf32>
    %56 = arith.select %54, %53, %55 : vector<8x128xi1>, vector<8x128xf32>
    %cst_27 = arith.constant 0.000000e+00 : f32
    %57 = vector.broadcast %cst_27 : f32 to vector<8x128xf32>
    %58 = arith.select %54, %57, %53 : vector<8x128xi1>, vector<8x128xf32>
    %59 = arith.mulf %58, %13 : vector<8x128xf32>
    %60 = math.tanh %52 : vector<8x128xf32>
    %61 = arith.subf %47, %60 : vector<8x128xf32>
    %62 = arith.mulf %56, %61 : vector<8x128xf32>
    %63 = arith.addf %60, %62 : vector<8x128xf32>
    %c24 = arith.constant 24 : index
    %c0_28 = arith.constant 0 : index
    %64 = vector.load %arg9[%c24, %c0_28] : memref<64x256xf32, #tpu.memory_space<vmem>>, vector<8x256xf32>
    %cst_29 = arith.constant dense<0.000000e+00> : vector<8x256xf32>
    %65 = tpu.matmul %63, %7, %cst_29 {dimension_numbers = #tpu.dot_dimension_numbers<[1], [0], [0], [1], [0, 0, 1, 1], [], []>} : vector<8x128xf32>, vector<128x256xf32>, vector<8x256xf32> -> vector<8x256xf32>
    %66 = arith.addf %64, %65 : vector<8x256xf32>
    %67 = vector.extract_strided_slice %66 {offsets = [0, 0], sizes = [8, 128], strides = [1, 1]} : vector<8x256xf32> to vector<8x128xf32>
    %68 = vector.extract_strided_slice %66 {offsets = [0, 128], sizes = [8, 128], strides = [1, 1]} : vector<8x256xf32> to vector<8x128xf32>
    %69 = arith.addf %59, %67 : vector<8x128xf32>
    %70 = arith.cmpf ogt, %69, %10 : vector<8x128xf32>
    %cst_30 = arith.constant 0.000000e+00 : f32
    %71 = vector.broadcast %cst_30 : f32 to vector<8x128xf32>
    %72 = arith.select %70, %69, %71 : vector<8x128xi1>, vector<8x128xf32>
    %cst_31 = arith.constant 0.000000e+00 : f32
    %73 = vector.broadcast %cst_31 : f32 to vector<8x128xf32>
    %74 = arith.select %70, %73, %69 : vector<8x128xi1>, vector<8x128xf32>
    %75 = arith.mulf %74, %13 : vector<8x128xf32>
    %76 = math.tanh %68 : vector<8x128xf32>
    %77 = arith.subf %63, %76 : vector<8x128xf32>
    %78 = arith.mulf %72, %77 : vector<8x128xf32>
    %79 = arith.addf %76, %78 : vector<8x128xf32>
    %c32 = arith.constant 32 : index
    %c0_32 = arith.constant 0 : index
    %80 = vector.load %arg9[%c32, %c0_32] : memref<64x256xf32, #tpu.memory_space<vmem>>, vector<8x256xf32>
    %cst_33 = arith.constant dense<0.000000e+00> : vector<8x256xf32>
    %81 = tpu.matmul %79, %7, %cst_33 {dimension_numbers = #tpu.dot_dimension_numbers<[1], [0], [0], [1], [0, 0, 1, 1], [], []>} : vector<8x128xf32>, vector<128x256xf32>, vector<8x256xf32> -> vector<8x256xf32>
    %82 = arith.addf %80, %81 : vector<8x256xf32>
    %83 = vector.extract_strided_slice %82 {offsets = [0, 0], sizes = [8, 128], strides = [1, 1]} : vector<8x256xf32> to vector<8x128xf32>
    %84 = vector.extract_strided_slice %82 {offsets = [0, 128], sizes = [8, 128], strides = [1, 1]} : vector<8x256xf32> to vector<8x128xf32>
    %85 = arith.addf %75, %83 : vector<8x128xf32>
    %86 = arith.cmpf ogt, %85, %10 : vector<8x128xf32>
    %cst_34 = arith.constant 0.000000e+00 : f32
    %87 = vector.broadcast %cst_34 : f32 to vector<8x128xf32>
    %88 = arith.select %86, %85, %87 : vector<8x128xi1>, vector<8x128xf32>
    %cst_35 = arith.constant 0.000000e+00 : f32
    %89 = vector.broadcast %cst_35 : f32 to vector<8x128xf32>
    %90 = arith.select %86, %89, %85 : vector<8x128xi1>, vector<8x128xf32>
    %91 = arith.mulf %90, %13 : vector<8x128xf32>
    %92 = math.tanh %84 : vector<8x128xf32>
    %93 = arith.subf %79, %92 : vector<8x128xf32>
    %94 = arith.mulf %88, %93 : vector<8x128xf32>
    %95 = arith.addf %92, %94 : vector<8x128xf32>
    %c40 = arith.constant 40 : index
    %c0_36 = arith.constant 0 : index
    %96 = vector.load %arg9[%c40, %c0_36] : memref<64x256xf32, #tpu.memory_space<vmem>>, vector<8x256xf32>
    %cst_37 = arith.constant dense<0.000000e+00> : vector<8x256xf32>
    %97 = tpu.matmul %95, %7, %cst_37 {dimension_numbers = #tpu.dot_dimension_numbers<[1], [0], [0], [1], [0, 0, 1, 1], [], []>} : vector<8x128xf32>, vector<128x256xf32>, vector<8x256xf32> -> vector<8x256xf32>
    %98 = arith.addf %96, %97 : vector<8x256xf32>
    %99 = vector.extract_strided_slice %98 {offsets = [0, 0], sizes = [8, 128], strides = [1, 1]} : vector<8x256xf32> to vector<8x128xf32>
    %100 = vector.extract_strided_slice %98 {offsets = [0, 128], sizes = [8, 128], strides = [1, 1]} : vector<8x256xf32> to vector<8x128xf32>
    %101 = arith.addf %91, %99 : vector<8x128xf32>
    %102 = arith.cmpf ogt, %101, %10 : vector<8x128xf32>
    %cst_38 = arith.constant 0.000000e+00 : f32
    %103 = vector.broadcast %cst_38 : f32 to vector<8x128xf32>
    %104 = arith.select %102, %101, %103 : vector<8x128xi1>, vector<8x128xf32>
    %cst_39 = arith.constant 0.000000e+00 : f32
    %105 = vector.broadcast %cst_39 : f32 to vector<8x128xf32>
    %106 = arith.select %102, %105, %101 : vector<8x128xi1>, vector<8x128xf32>
    %107 = arith.mulf %106, %13 : vector<8x128xf32>
    %108 = math.tanh %100 : vector<8x128xf32>
    %109 = arith.subf %95, %108 : vector<8x128xf32>
    %110 = arith.mulf %104, %109 : vector<8x128xf32>
    %111 = arith.addf %108, %110 : vector<8x128xf32>
    %c48 = arith.constant 48 : index
    %c0_40 = arith.constant 0 : index
    %112 = vector.load %arg9[%c48, %c0_40] : memref<64x256xf32, #tpu.memory_space<vmem>>, vector<8x256xf32>
    %cst_41 = arith.constant dense<0.000000e+00> : vector<8x256xf32>
    %113 = tpu.matmul %111, %7, %cst_41 {dimension_numbers = #tpu.dot_dimension_numbers<[1], [0], [0], [1], [0, 0, 1, 1], [], []>} : vector<8x128xf32>, vector<128x256xf32>, vector<8x256xf32> -> vector<8x256xf32>
    %114 = arith.addf %112, %113 : vector<8x256xf32>
    %115 = vector.extract_strided_slice %114 {offsets = [0, 0], sizes = [8, 128], strides = [1, 1]} : vector<8x256xf32> to vector<8x128xf32>
    %116 = vector.extract_strided_slice %114 {offsets = [0, 128], sizes = [8, 128], strides = [1, 1]} : vector<8x256xf32> to vector<8x128xf32>
    %117 = arith.addf %107, %115 : vector<8x128xf32>
    %118 = arith.cmpf ogt, %117, %10 : vector<8x128xf32>
    %cst_42 = arith.constant 0.000000e+00 : f32
    %119 = vector.broadcast %cst_42 : f32 to vector<8x128xf32>
    %120 = arith.select %118, %117, %119 : vector<8x128xi1>, vector<8x128xf32>
    %cst_43 = arith.constant 0.000000e+00 : f32
    %121 = vector.broadcast %cst_43 : f32 to vector<8x128xf32>
    %122 = arith.select %118, %121, %117 : vector<8x128xi1>, vector<8x128xf32>
    %123 = arith.mulf %122, %13 : vector<8x128xf32>
    %124 = math.tanh %116 : vector<8x128xf32>
    %125 = arith.subf %111, %124 : vector<8x128xf32>
    %126 = arith.mulf %120, %125 : vector<8x128xf32>
    %127 = arith.addf %124, %126 : vector<8x128xf32>
    %c56 = arith.constant 56 : index
    %c0_44 = arith.constant 0 : index
    %128 = vector.load %arg9[%c56, %c0_44] : memref<64x256xf32, #tpu.memory_space<vmem>>, vector<8x256xf32>
    %cst_45 = arith.constant dense<0.000000e+00> : vector<8x256xf32>
    %129 = tpu.matmul %127, %7, %cst_45 {dimension_numbers = #tpu.dot_dimension_numbers<[1], [0], [0], [1], [0, 0, 1, 1], [], []>} : vector<8x128xf32>, vector<128x256xf32>, vector<8x256xf32> -> vector<8x256xf32>
    %130 = arith.addf %128, %129 : vector<8x256xf32>
    %131 = vector.extract_strided_slice %130 {offsets = [0, 0], sizes = [8, 128], strides = [1, 1]} : vector<8x256xf32> to vector<8x128xf32>
    %132 = vector.extract_strided_slice %130 {offsets = [0, 128], sizes = [8, 128], strides = [1, 1]} : vector<8x256xf32> to vector<8x128xf32>
    %133 = arith.addf %123, %131 : vector<8x128xf32>
    %134 = arith.cmpf ogt, %133, %10 : vector<8x128xf32>
    %cst_46 = arith.constant 0.000000e+00 : f32
    %135 = vector.broadcast %cst_46 : f32 to vector<8x128xf32>
    %136 = arith.select %134, %133, %135 : vector<8x128xi1>, vector<8x128xf32>
    %137 = math.tanh %132 : vector<8x128xf32>
    %138 = arith.subf %127, %137 : vector<8x128xf32>
    %139 = arith.mulf %136, %138 : vector<8x128xf32>
    %140 = arith.addf %137, %139 : vector<8x128xf32>
    %c0_47 = arith.constant 0 : index
    %c0_48 = arith.constant 0 : index
    %141 = vector.load %arg6[%c0_47, %c0_48] : memref<128x128xf32, #tpu.memory_space<vmem>>, vector<128x128xf32>
    %cst_49 = arith.constant dense<0.000000e+00> : vector<8x128xf32>
    %142 = tpu.matmul %140, %141, %cst_49 {dimension_numbers = #tpu.dot_dimension_numbers<[1], [0], [0], [1], [0, 0, 1, 1], [], []>} : vector<8x128xf32>, vector<128x128xf32>, vector<8x128xf32> -> vector<8x128xf32>
    %c0_50 = arith.constant 0 : index
    %c0_51 = arith.constant 0 : index
    %143 = vector.load %arg7[%c0_50, %c0_51] : memref<1x128xf32, #tpu.memory_space<vmem>>, vector<1x128xf32>
    %144 = vector.broadcast %143 : vector<1x128xf32> to vector<8x128xf32>
    %145 = arith.addf %142, %144 : vector<8x128xf32>
    %c0_52 = arith.constant 0 : index
    %c0_53 = arith.constant 0 : index
    %146 = vector.load %arg8[%c0_52, %c0_53] : memref<8x128xf32, #tpu.memory_space<vmem>>, vector<8x128xf32>
    tpu.vector_store %arg8[%c0_52, %c0_53], %145 {strides = array<i32>} : memref<8x128xf32, #tpu.memory_space<vmem>>, vector<8x128xf32>,
    return
  }
}

</mosaic_0001>

<bundles_post_ra>
// kernel: pggru_net_forward.1
= control target key start
LH: loop header
LB: loop body
LE: loop exit
PB: predicated region body
PF: predicated region fallthrough
CT: control target
= control target key end

     0   :  { %v1413_v2 = vmov 0.0   ;;  %vm51_vm0 = vcmask 64512   ;;  %v41_v63 = vlaneseq  ;;  %vm1415_vm8 = vmmov 0   ;;  %s1905_s1 = inlined_call_operand.vmem [shape: f32[8,256], index: 1, kind: input, shape index: {}]   ;;  %s1906_s0 = inlined_call_operand.vmem [shape: f32[64,8], index: 0, kind: input, shape index: {}]   ;;  %s1907_s3 = inlined_call_operand.vmem [shape: f32[128,256], index: 3, kind: input, shape index: {}]   ;;  %s1908_s2 = inlined_call_operand.vmem [shape: f32[1,256], index: 2, kind: input, shape index: {}]   ;;  %s1909_s4 = inlined_call_operand.vmem [shape: f32[1,128], index: 4, kind: input, shape index: {}]   ;;  %s1910_s5 = inlined_call_operand.vmem [shape: f32[1,128], index: 5, kind: input, shape index: {}]   ;;  %s1911_s6 = inlined_call_operand.vmem [shape: f32[128,128], index: 6, kind: input, shape index: {}]   ;;  %s1912_s7 = inlined_call_operand.vmem [shape: f32[1,128], index: 7, kind: input, shape index: {}]   ;;  %s1913_s8 = inlined_call_operand.vmem [shape: f32[8,128], index: 8, kind: output, shape index: {}]  }
   0x1   :  { %v38_v0 = vld [vmem:[%s1905_s1 + $0x8] sm:$0xff]  ;;  %v37_v1 = vld [vmem:[%s1905_s1] sm:$0xff]  ;;  %140 = vmatprep.mubr.f32.mxu1 %v1413_v2  ;;  %569 = vmatprep.mubr.f32.mxu0 %v1413_v2  ;;  %v208_v5 = vld [vmem:[%s1907_s3 + $0x18] sm:$0xff] }
   0x2   :  { %v29_v3 = vld [vmem:[%s1906_s0] sm:$0xff]  ;;  %76 = vmatprep.subr.mxu1 %v38_v0  ;;  %v206_v4 = vld [vmem:[%s1907_s3 + $0x8] sm:$0xff]  ;;  %v207_v8 = vld [vmem:[%s1907_s3 + $0x10] sm:$0xff] }
   0x3   :  { %v205_v6 = vld [vmem:[%s1907_s3] sm:$0xff]  ;;  %77 = vmatpush1.msra.mxu1 %v37_v1  ;;  %v1481_v7 = vpack.c.bf16 %v208_v5, %v206_v4  ;;  %v210_v9 = vld [vmem:[%s1907_s3 + $0x28] sm:$0xff]  ;;  %v212_v11 = vld [vmem:[%s1907_s3 + $0x38] sm:$0xff] }
   0x4   :  { %1019 = vmatmul.mubr.msk.f32.vlgmr.msra.gmra.mrb[0].mxu1 %vm51_vm0, %v29_v3  ;;  %v1490_v10 = vpack.c.bf16 %v207_v8, %v205_v6  ;;  %v209_v12 = vld [vmem:[%s1907_s3 + $0x20] sm:$0xff]  ;;  %v211_v13 = vld [vmem:[%s1907_s3 + $0x30] sm:$0xff]  ;;  %v30_v14 = vld [vmem:[%s1906_s0 + $0x8] sm:$0xff]  ;;  %v1506_v15 = vpack.c.bf16 %v212_v11, %v210_v9  ;;  %v42_v3 = vshrl.u32 %v41_v63, 7 }
   0x5   :  { %1083 = vmatprep.subr.bf16.mxu1 %v1481_v7  ;;  %146 = vmatprep.mubr.f32.mxu1 %v1413_v2  ;;  %v214_v16 = vld [vmem:[%s1907_s3 + $0x48] sm:$0xff]  ;;  %v216_v17 = vld [vmem:[%s1907_s3 + $0x58] sm:$0xff]  ;;  %v1515_v18 = vpack.c.bf16 %v211_v13, %v209_v12  ;;  %v213_v20 = vld [vmem:[%s1907_s3 + $0x40] sm:$0xff] }
   0x6   :  { %1085 = vmatpush1.bf16.msra.mxu1 %v1490_v10  ;;  %1179 = vmatprep.subr.bf16.mxu0 %v1481_v7  ;;  %v1519_v19 = vpack.c.bf16 %v216_v17, %v214_v16  ;;  %v215_v21 = vld [vmem:[%s1907_s3 + $0x50] sm:$0xff]  ;;  %v218_v22 = vld [vmem:[%s1907_s3 + $0x68] sm:$0xff]  ;;  %v220_v23 = vld [vmem:[%s1907_s3 + $0x78] sm:$0xff]  ;;  %v43_v6 = vsub.s32 0, %v42_v3  ;;  %v47_v11 = vsub.s32 1, %v42_v3 }
   0x7   :  { %1087 = vmatprep.subr.bf16.mxu1 %v1506_v15  ;;  %1181 = vmatpush1.bf16.msra.mxu0 %v1490_v10  ;;  %v31_v24 = vld [vmem:[%s1906_s0 + $0x10] sm:$0xff]  ;;  %v1541_v25 = vpack.c.bf16 %v215_v21, %v213_v20  ;;  %v1544_v26 = vpack.c.bf16 %v220_v23, %v218_v22  ;;  %v217_v27 = vld [vmem:[%s1907_s3 + $0x60] sm:$0xff]  ;;  %v222_v29 = vld [vmem:[%s1907_s3 + $0x88] sm:$0xff] }
   0x8   :  { %1020 = vmatmul.mubr.msk.f32.gmra.mrb[2].mxu1 %vm51_vm0, %v30_v14  ;;  %1183 = vmatprep.subr.bf16.mxu0 %v1506_v15  ;;  %v219_v28 = vld [vmem:[%s1907_s3 + $0x70] sm:$0xff]  ;;  %v224_v30 = vld [vmem:[%s1907_s3 + $0x98] sm:$0xff]  ;;  %v221_v34 = vld [vmem:[%s1907_s3 + $0x80] sm:$0xff] }
   0x9   :  { %152 = vmatprep.mubr.f32.mxu1 %v1413_v2  ;;  %v32_v31 = vld [vmem:[%s1906_s0 + $0x18] sm:$0xff]  ;;  %v1566_v32 = vpack.c.bf16 %v219_v28, %v217_v27  ;;  %v1569_v33 = vpack.c.bf16 %v224_v30, %v222_v29  ;;  %v223_v35 = vld [vmem:[%s1907_s3 + $0x90] sm:$0xff]  ;;  %v226_v36 = vld [vmem:[%s1907_s3 + $0xa8] sm:$0xff] }
   0xa   :  { %1089 = vmatpush1.bf16.msra.mxu1 %v1515_v18  ;;  %v228_v37 = vld [vmem:[%s1907_s3 + $0xb8] sm:$0xff]  ;;  %v33_v38 = vld [vmem:[%s1906_s0 + $0x20] sm:$0xff]  ;;  %v1591_v39 = vpack.c.bf16 %v223_v35, %v221_v34  ;;  %v227_v42 = vld [vmem:[%s1907_s3 + $0xb0] sm:$0xff] }
   0xb   :  { %1091 = vmatprep.subr.bf16.mxu1 %v1519_v19  ;;  %1185 = vmatpush1.bf16.msra.mxu0 %v1515_v18  ;;  %v1594_v40 = vpack.c.bf16 %v228_v37, %v226_v36  ;;  %v225_v41 = vld [vmem:[%s1907_s3 + $0xa0] sm:$0xff]  ;;  %v230_v43 = vld [vmem:[%s1907_s3 + $0xc8] sm:$0xff]  ;;  %v232_v44 = vld [vmem:[%s1907_s3 + $0xd8] sm:$0xff] }
   0xc   :  { %1021 = vmatmul.mubr.msk.f32.gmra.mrb[4].mxu1 %vm51_vm0, %v31_v24  ;;  %1187 = vmatprep.subr.bf16.mxu0 %v1519_v19  ;;  %v34_v45 = vld [vmem:[%s1906_s0 + $0x28] sm:$0xff]  ;;  %v1616_v46 = vpack.c.bf16 %v227_v42, %v225_v41  ;;  %v1619_v47 = vpack.c.bf16 %v232_v44, %v230_v43  ;;  %v229_v48 = vld [vmem:[%s1907_s3 + $0xc0] sm:$0xff]  ;;  %v231_v49 = vld [vmem:[%s1907_s3 + $0xd0] sm:$0xff] }
   0xd   :  { %158 = vmatprep.mubr.f32.mxu1 %v1413_v2  ;;  %v234_v50 = vld [vmem:[%s1907_s3 + $0xe8] sm:$0xff]  ;;  %v236_v51 = vld [vmem:[%s1907_s3 + $0xf8] sm:$0xff]  ;;  %v35_v52 = vld [vmem:[%s1906_s0 + $0x30] sm:$0xff]  ;;  %v1641_v53 = vpack.c.bf16 %v231_v49, %v229_v48 }
   0xe   :  { %1093 = vmatpush1.bf16.msra.mxu1 %v1541_v25  ;;  %v1644_v54 = vpack.c.bf16 %v236_v51, %v234_v50  ;;  %v233_v55 = vld [vmem:[%s1907_s3 + $0xe0] sm:$0xff]  ;;  %v235_v56 = vld [vmem:[%s1907_s3 + $0xf0] sm:$0xff]  ;;  %v36_v57 = vld [vmem:[%s1906_s0 + $0x38] sm:$0xff] }
   0xf   :  { %1095 = vmatprep.subr.bf16.mxu1 %v1544_v26  ;;  %1189 = vmatpush1.bf16.msra.mxu0 %v1541_v25  ;;  %v1660_v58 = vpack.c.bf16 %v235_v56, %v233_v55  ;;  %v39_v9 = vld [vmem:[%s1908_s2] sm:$0x3] }
  0x10   :  { %1022 = vmatmul.mubr.msk.f32.gmra.mrb[6].mxu1 %vm51_vm0, %v32_v31  ;;  %1191 = vmatprep.subr.bf16.mxu0 %v1544_v26  ;;  %v1712_v13 = vrot.slane %v39_v9, %v43_v6  ;;  %v1714_v14 = vrot.slane %v39_v9, %v47_v11  ;;  %v1719_v16 = vld [vmem:[%s1909_s4] ss:$0 sm:$0xff] }
  0x11   :  { %164 = vmatprep.mubr.f32.mxu1 %v1413_v2  ;;  %v1743_v31 = vld [vmem:[%s1910_s5] ss:$0 sm:$0xff] }
  0x12   :  { %1097 = vmatpush1.bf16.msra.mxu1 %v1566_v32 }
  0x13   :  { %1099 = vmatprep.subr.bf16.mxu1 %v1569_v33  ;;  %1193 = vmatpush1.bf16.msra.mxu0 %v1566_v32 }
  0x14   :  { %1023 = vmatmul.mubr.msk.f32.gmra.mrb[8].mxu1 %vm51_vm0, %v33_v38  ;;  %1195 = vmatprep.subr.bf16.mxu0 %v1569_v33 }
  0x15   :  { %170 = vmatprep.mubr.f32.mxu1 %v1413_v2 }
  0x16   :  { %1101 = vmatpush1.bf16.msra.mxu1 %v1591_v39 }
  0x17   :  { %1103 = vmatprep.subr.bf16.mxu1 %v1594_v40  ;;  %1197 = vmatpush1.bf16.msra.mxu0 %v1591_v39 }
  0x18   :  { %1024 = vmatmul.mubr.msk.f32.gmra.mrb[10].mxu1 %vm51_vm0, %v34_v45  ;;  %1199 = vmatprep.subr.bf16.mxu0 %v1594_v40 }
  0x19   :  { %176 = vmatprep.mubr.f32.mxu1 %v1413_v2 }
  0x1a   :  { %1105 = vmatpush1.bf16.msra.mxu1 %v1616_v46 }
  0x1b   :  { %1107 = vmatprep.subr.bf16.mxu1 %v1619_v47  ;;  %1201 = vmatpush1.bf16.msra.mxu0 %v1616_v46 }
  0x1c   :  { %1025 = vmatmul.mubr.msk.f32.gmra.mrb[12].mxu1 %vm51_vm0, %v35_v52  ;;  %1203 = vmatprep.subr.bf16.mxu0 %v1619_v47 }
  0x1d   :  { %182 = vmatprep.mubr.f32.mxu1 %v1413_v2 }
  0x1e   :  { %1109 = vmatpush1.bf16.msra.mxu1 %v1641_v53 }
  0x1f   :  { %1111 = vmatprep.subr.bf16.mxu1 %v1644_v54  ;;  %1205 = vmatpush1.bf16.msra.mxu0 %v1641_v53 }
  0x20   :  { %1026 = vmatmul.mubr.msk.f32.gmra.mrb[14].mxu1 %vm51_vm0, %v36_v57  ;;  %1207 = vmatprep.subr.bf16.mxu0 %v1644_v54 }
  0x21   :  { %317 = vmatprep.mubr.f32.mxu1 %v1413_v2 }
  0x22   :  { %1113 = vmatpush1.bf16.msra.mxu1 %v1660_v58 }
  0x23   :  { %1115 = vmatprep.subr.bf16.mxu1 %v1481_v7  ;;  %1209 = vmatpush1.bf16.msra.mxu0 %v1660_v58 }
  0x24   :  { %1211 = vmatprep.subr.bf16.mxu0 %v1481_v7 }
  0x25   :  { %318 = vmatmul.mubr.f32.vlgmr.msra.gmra.mrb[0].mxu1 %v1413_v2 }
  0x26   :  { %1117 = vmatpush1.bf16.msra.mxu1 %v1490_v10  ;;  %401 = vmatprep.mubr.f32.mxu1 %v1413_v2 }
  0x27   :  { %1119 = vmatprep.subr.bf16.mxu1 %v1506_v15 }
  0x2a   :  { %1121 = vmatpush1.bf16.msra.mxu1 %v1515_v18 }
  0x2b   :  { %1123 = vmatprep.subr.bf16.mxu1 %v1519_v19 }
  0x2e   :  { %1125 = vmatpush1.bf16.msra.mxu1 %v1541_v25 }
  0x2f   :  { %1127 = vmatprep.subr.bf16.mxu1 %v1544_v26 }
  0x32   :  { %1129 = vmatpush1.bf16.msra.mxu1 %v1566_v32 }
  0x33   :  { %1131 = vmatprep.subr.bf16.mxu1 %v1569_v33 }
  0x36   :  { %1133 = vmatpush1.bf16.msra.mxu1 %v1591_v39 }
  0x37   :  { %1135 = vmatprep.subr.bf16.mxu1 %v1594_v40 }
  0x3a   :  { %1137 = vmatpush1.bf16.msra.mxu1 %v1616_v46 }
  0x3b   :  { %1139 = vmatprep.subr.bf16.mxu1 %v1619_v47 }
  0x3e   :  { %1141 = vmatpush1.bf16.msra.mxu1 %v1641_v53 }
  0x3f   :  { %1143 = vmatprep.subr.bf16.mxu1 %v1644_v54 }
  0x42   :  { %1145 = vmatpush1.bf16.msra.mxu1 %v1660_v58 }
  0x43   :  { %1147 = vmatprep.subr.bf16.mxu1 %v1481_v7 }
  0xe3   :  { %v1689_v59 = vpop.f32.mrb[6].mxu1 }
  0xe4   :  { %v1691_v60 = vpop.f32.mrb[7].mxu1 }
  0xe7   :  { %v1693_v61 = vpop.f32.mrb[8].mxu1 }
  0xe8   :  { %v1695_v62 = vpop.f32.mrb[9].mxu1 }
  0xeb   :  { %v1697_v0 = vpop.f32.mrb[10].mxu1 }
  0xec   :  { %v1699_v1 = vpop.f32.mrb[11].mxu1 }
  0xef   :  { %v1701_v4 = vpop.f32.mrb[12].mxu1 }
  0xf0   :  { %v1703_v5 = vpop.f32.mrb[13].mxu1 }
  0xf3   :  { %v1705_v8 = vpop.f32.mrb[14].mxu1 }
  0xf4   :  { %v1710_v12 = vpop.f32.mrb[15].mxu1 }
  0xf8   :  { %v319_v17 = vpop.f32.mrb[0].mxu1 }
  0xf9   :  { %v1362_v20 = vadd.f32 %v319_v17, %v1712_v13  ;;  %v321_v21 = vpop.f32.mrb[1].mxu1 }
  0xfa   :  { %v1363_v22 = vadd.f32 %v321_v21, %v1714_v14  ;;  %v163_v21 = vadd.f32 %v1691_v60, %v1714_v14  ;;  %v169_v60 = vadd.f32 %v1695_v62, %v1714_v14  ;;  %v175_v62 = vadd.f32 %v1699_v1, %v1714_v14 }
  0xfb   :  { %vm327_vm1 = vcmp.gt.f32.partialorder %v1362_v20, %v1719_v16 }
  0xfc   :  { %v329_v23 = vsel %vm327_vm1, 0.0, %v1362_v20  ;;  %1397 = vtanh.f32 %v1363_v22  ;;  %v328_v28 = vsel %vm327_vm1, %v1362_v20, 0.0  ;;  %v161_v20 = vadd.f32 %v1689_v59, %v1712_v13 }
  0xfd   :  { %v330_v35 = vmul.f32 %v1743_v31, %v329_v23  ;;  %v167_v59 = vadd.f32 %v1693_v61, %v1712_v13  ;;  %v173_v61 = vadd.f32 %v1697_v0, %v1712_v13 }
 0x106   :  { %v1398_v24 = vpop.eup %1397 }
 0x107   :  { %v332_v27 = vsub.f32 0.0, %v1398_v24 }
 0x109   :  { %v333_v29 = vmul.f32 %v332_v27, %v328_v28 }
 0x10b   :  { %v334_v30 = vadd.f32 %v1398_v24, %v333_v29 }
 0x10d   :  { %402 = vmatmul.mubr.f32.vlgmr.msra.gmra.mrb[2].mxu1 %v334_v30 }
 0x10e   :  { %1149 = vmatpush1.bf16.msra.mxu1 %v1490_v10  ;;  %485 = vmatprep.mubr.f32.mxu1 %v1413_v2 }
 0x10f   :  { %1151 = vmatprep.subr.bf16.mxu1 %v1506_v15 }
 0x112   :  { %1153 = vmatpush1.bf16.msra.mxu1 %v1515_v18 }
 0x113   :  { %1155 = vmatprep.subr.bf16.mxu1 %v1519_v19 }
 0x116   :  { %1157 = vmatpush1.bf16.msra.mxu1 %v1541_v25 }
 0x117   :  { %1159 = vmatprep.subr.bf16.mxu1 %v1544_v26 }
 0x11a   :  { %1161 = vmatpush1.bf16.msra.mxu1 %v1566_v32 }
 0x11b   :  { %1163 = vmatprep.subr.bf16.mxu1 %v1569_v33 }
 0x11e   :  { %1165 = vmatpush1.bf16.msra.mxu1 %v1591_v39 }
 0x11f   :  { %1167 = vmatprep.subr.bf16.mxu1 %v1594_v40 }
 0x122   :  { %1169 = vmatpush1.bf16.msra.mxu1 %v1616_v46 }
 0x123   :  { %1171 = vmatprep.subr.bf16.mxu1 %v1619_v47 }
 0x126   :  { %1173 = vmatpush1.bf16.msra.mxu1 %v1641_v53 }
 0x127   :  { %1175 = vmatprep.subr.bf16.mxu1 %v1644_v54 }
 0x12a   :  { %1177 = vmatpush1.bf16.msra.mxu1 %v1660_v58 }
 0x1e0   :  { %v403_v34 = vpop.f32.mrb[2].mxu1 }
 0x1e1   :  { %v1364_v36 = vadd.f32 %v403_v34, %v1712_v13  ;;  %v405_v37 = vpop.f32.mrb[3].mxu1 }
 0x1e2   :  { %v1365_v38 = vadd.f32 %v405_v37, %v1714_v14 }
 0x1e3   :  { %v410_v41 = vadd.f32 %v1364_v36, %v330_v35 }
 0x1e4   :  { %1399 = vtanh.f32 %v1365_v38 }
 0x1e5   :  { %vm411_vm2 = vcmp.gt.f32.partialorder %v410_v41, %v1719_v16 }
 0x1e6   :  { %v413_v42 = vsel %vm411_vm2, 0.0, %v410_v41  ;;  %v412_v45 = vsel %vm411_vm2, %v410_v41, 0.0 }
 0x1e7   :  { %v414_v51 = vmul.f32 %v1743_v31, %v413_v42 }
 0x1ee   :  { %v1400_v43 = vpop.eup %1399 }
 0x1ef   :  { %v416_v44 = vsub.f32 %v334_v30, %v1400_v43 }
 0x1f1   :  { %v417_v48 = vmul.f32 %v416_v44, %v412_v45 }
 0x1f3   :  { %v418_v49 = vadd.f32 %v1400_v43, %v417_v48 }
 0x1f5   :  { %486 = vmatmul.mubr.f32.vlgmr.msra.gmra.mrb[4].mxu1 %v418_v49 }
 0x1f6   :  { %1079 = vmatprep.mubr.msk.f32.mxu1 %vm1415_vm8, %v1413_v2 }
 0x2c8   :  { %v487_v50 = vpop.f32.mrb[4].mxu1 }
 0x2c9   :  { %v1366_v52 = vadd.f32 %v487_v50, %v1712_v13  ;;  %v489_v55 = vpop.f32.mrb[5].mxu1 }
 0x2ca   :  { %v1367_v56 = vadd.f32 %v489_v55, %v1714_v14 }
 0x2cb   :  { %v494_v57 = vadd.f32 %v1366_v52, %v414_v51 }
 0x2cc   :  { %1401 = vtanh.f32 %v1367_v56 }
 0x2cd   :  { %vm495_vm3 = vcmp.gt.f32.partialorder %v494_v57, %v1719_v16 }
 0x2ce   :  { %v497_v63 = vsel %vm495_vm3, 0.0, %v494_v57  ;;  %v496_v9 = vsel %vm495_vm3, %v494_v57, 0.0 }
 0x2cf   :  { %v498_v23 = vmul.f32 %v1743_v31, %v497_v63 }
 0x2d6   :  { %v1402_v3 = vpop.eup %1401 }
 0x2d7   :  { %v500_v6 = vsub.f32 %v418_v49, %v1402_v3 }
 0x2d9   :  { %v501_v11 = vmul.f32 %v500_v6, %v496_v9 }
 0x2db   :  { %v502_v17 = vadd.f32 %v1402_v3, %v501_v11 }
 0x2dd   :  { %570 = vmatmul.mubr.f32.vlgmr.msra.gmra.mrb[0].mxu0 %v502_v17 }
 0x2de   :  { %1213 = vmatpush1.bf16.msra.mxu0 %v1490_v10  ;;  %653 = vmatprep.mubr.f32.mxu0 %v1413_v2 }
 0x2df   :  { %1215 = vmatprep.subr.bf16.mxu0 %v1506_v15 }
 0x2e2   :  { %1217 = vmatpush1.bf16.msra.mxu0 %v1515_v18 }
 0x2e3   :  { %1219 = vmatprep.subr.bf16.mxu0 %v1519_v19 }
 0x2e6   :  { %1221 = vmatpush1.bf16.msra.mxu0 %v1541_v25 }
 0x2e7   :  { %1223 = vmatprep.subr.bf16.mxu0 %v1544_v26 }
 0x2ea   :  { %1225 = vmatpush1.bf16.msra.mxu0 %v1566_v32 }
 0x2eb   :  { %1227 = vmatprep.subr.bf16.mxu0 %v1569_v33 }
 0x2ee   :  { %1229 = vmatpush1.bf16.msra.mxu0 %v1591_v39 }
 0x2ef   :  { %1231 = vmatprep.subr.bf16.mxu0 %v1594_v40 }
 0x2f2   :  { %1233 = vmatpush1.bf16.msra.mxu0 %v1616_v46 }
 0x2f3   :  { %1235 = vmatprep.subr.bf16.mxu0 %v1619_v47 }
 0x2f6   :  { %1237 = vmatpush1.bf16.msra.mxu0 %v1641_v53 }
 0x2f7   :  { %1239 = vmatprep.subr.bf16.mxu0 %v1644_v54 }
 0x2fa   :  { %1241 = vmatpush1.bf16.msra.mxu0 %v1660_v58 }
 0x2fb   :  { %1243 = vmatprep.subr.bf16.mxu0 %v1481_v7 }
 0x3b0   :  { %v571_v22 = vpop.f32.mrb[0].mxu0 }
 0x3b1   :  { %v576_v24 = vadd.f32 %v571_v22, %v161_v20  ;;  %v573_v27 = vpop.f32.mrb[1].mxu0 }
 0x3b2   :  { %v577_v28 = vadd.f32 %v573_v27, %v163_v21 }
 0x3b3   :  { %v578_v29 = vadd.f32 %v576_v24, %v498_v23 }
 0x3b4   :  { %1403 = vtanh.f32 %v577_v28 }
 0x3b5   :  { %vm579_vm4 = vcmp.gt.f32.partialorder %v578_v29, %v1719_v16 }
 0x3b6   :  { %v581_v30 = vsel %vm579_vm4, 0.0, %v578_v29  ;;  %v580_v36 = vsel %vm579_vm4, %v578_v29, 0.0 }
 0x3b7   :  { %v582_v42 = vmul.f32 %v1743_v31, %v581_v30 }
 0x3be   :  { %v1404_v34 = vpop.eup %1403 }
 0x3bf   :  { %v584_v35 = vsub.f32 %v502_v17, %v1404_v34 }
 0x3c1   :  { %v585_v37 = vmul.f32 %v584_v35, %v580_v36 }
 0x3c3   :  { %v586_v38 = vadd.f32 %v1404_v34, %v585_v37  ;;  %v929_v37 = vld [vmem:[%s1911_s6 + $0x40] sm:$0xff] }
 0x3c5   :  { %654 = vmatmul.mubr.f32.vlgmr.msra.gmra.mrb[2].mxu0 %v586_v38 }
 0x3c6   :  { %1245 = vmatpush1.bf16.msra.mxu0 %v1490_v10  ;;  %737 = vmatprep.mubr.f32.mxu0 %v1413_v2 }
 0x3c7   :  { %1247 = vmatprep.subr.bf16.mxu0 %v1506_v15 }
 0x3ca   :  { %1249 = vmatpush1.bf16.msra.mxu0 %v1515_v18 }
 0x3cb   :  { %1251 = vmatprep.subr.bf16.mxu0 %v1519_v19 }
 0x3ce   :  { %1253 = vmatpush1.bf16.msra.mxu0 %v1541_v25 }
 0x3cf   :  { %1255 = vmatprep.subr.bf16.mxu0 %v1544_v26 }
 0x3d2   :  { %1257 = vmatpush1.bf16.msra.mxu0 %v1566_v32 }
 0x3d3   :  { %1259 = vmatprep.subr.bf16.mxu0 %v1569_v33 }
 0x3d6   :  { %1261 = vmatpush1.bf16.msra.mxu0 %v1591_v39 }
 0x3d7   :  { %1263 = vmatprep.subr.bf16.mxu0 %v1594_v40 }
 0x3da   :  { %1265 = vmatpush1.bf16.msra.mxu0 %v1616_v46 }
 0x3db   :  { %1267 = vmatprep.subr.bf16.mxu0 %v1619_v47 }
 0x3de   :  { %1269 = vmatpush1.bf16.msra.mxu0 %v1641_v53 }
 0x3df   :  { %1271 = vmatprep.subr.bf16.mxu0 %v1644_v54 }
 0x3e2   :  { %1273 = vmatpush1.bf16.msra.mxu0 %v1660_v58 }
 0x3e3   :  { %1275 = vmatprep.subr.bf16.mxu0 %v1481_v7 }
 0x498   :  { %v655_v41 = vpop.f32.mrb[2].mxu0 }
 0x499   :  { %v660_v43 = vadd.f32 %v655_v41, %v167_v59  ;;  %v657_v44 = vpop.f32.mrb[3].mxu0  ;;  %v932_v41 = vld [vmem:[%s1911_s6 + $0x58] sm:$0xff] }
 0x49a   :  { %v661_v45 = vadd.f32 %v657_v44, %v169_v60  ;;  %v931_v60 = vld [vmem:[%s1911_s6 + $0x50] sm:$0xff]  ;;  %v934_v44 = vld [vmem:[%s1911_s6 + $0x68] sm:$0xff] }
 0x49b   :  { %v662_v48 = vadd.f32 %v660_v43, %v582_v42  ;;  %v1354_v42 = vpack.c.bf16 %v932_v41, %v931_v60  ;;  %v933_v43 = vld [vmem:[%s1911_s6 + $0x60] sm:$0xff] }
 0x49c   :  { %1405 = vtanh.f32 %v661_v45  ;;  %v1357_v45 = vpack.c.bf16 %v934_v44, %v933_v43 }
 0x49d   :  { %vm663_vm5 = vcmp.gt.f32.partialorder %v662_v48, %v1719_v16 }
 0x49e   :  { %v665_v49 = vsel %vm663_vm5, 0.0, %v662_v48  ;;  %v664_v52 = vsel %vm663_vm5, %v662_v48, 0.0  ;;  %v935_v48 = vld [vmem:[%s1911_s6 + $0x70] sm:$0xff] }
 0x49f   :  { %v666_v63 = vmul.f32 %v1743_v31, %v665_v49  ;;  %v936_v49 = vld [vmem:[%s1911_s6 + $0x78] sm:$0xff] }
 0x4a6   :  { %v1406_v50 = vpop.eup %1405 }
 0x4a7   :  { %v668_v51 = vsub.f32 %v586_v38, %v1406_v50  ;;  %v930_v38 = vld [vmem:[%s1911_s6 + $0x48] sm:$0xff] }
 0x4a8   :  { %v1351_v59 = vpack.c.bf16 %v930_v38, %v929_v37 }
 0x4a9   :  { %v669_v55 = vmul.f32 %v668_v51, %v664_v52  ;;  %v185_v51 = vadd.f32 %v1705_v8, %v1712_v13  ;;  %v1029_v8 = vld [vmem:[%s1912_s7] ss:$0 sm:$0xff] }
 0x4ab   :  { %v670_v56 = vadd.f32 %v1406_v50, %v669_v55  ;;  %v1360_v50 = vpack.c.bf16 %v936_v49, %v935_v48 }
 0x4ad   :  { %738 = vmatmul.mubr.f32.vlgmr.msra.gmra.mrb[4].mxu0 %v670_v56 }
 0x4ae   :  { %1277 = vmatpush1.bf16.msra.mxu0 %v1490_v10  ;;  %821 = vmatprep.mubr.f32.mxu0 %v1413_v2 }
 0x4af   :  { %1279 = vmatprep.subr.bf16.mxu0 %v1506_v15 }
 0x4b2   :  { %1281 = vmatpush1.bf16.msra.mxu0 %v1515_v18 }
 0x4b3   :  { %1283 = vmatprep.subr.bf16.mxu0 %v1519_v19 }
 0x4b6   :  { %1285 = vmatpush1.bf16.msra.mxu0 %v1541_v25 }
 0x4b7   :  { %1287 = vmatprep.subr.bf16.mxu0 %v1544_v26 }
 0x4ba   :  { %1289 = vmatpush1.bf16.msra.mxu0 %v1566_v32 }
 0x4bb   :  { %1291 = vmatprep.subr.bf16.mxu0 %v1569_v33 }
 0x4be   :  { %1293 = vmatpush1.bf16.msra.mxu0 %v1591_v39 }
 0x4bf   :  { %1295 = vmatprep.subr.bf16.mxu0 %v1594_v40 }
 0x4c2   :  { %1297 = vmatpush1.bf16.msra.mxu0 %v1616_v46 }
 0x4c3   :  { %1299 = vmatprep.subr.bf16.mxu0 %v1619_v47 }
 0x4c6   :  { %1301 = vmatpush1.bf16.msra.mxu0 %v1641_v53 }
 0x4c7   :  { %1303 = vmatprep.subr.bf16.mxu0 %v1644_v54 }
 0x4ca   :  { %1305 = vmatpush1.bf16.msra.mxu0 %v1660_v58 }
 0x4cb   :  { %1307 = vmatprep.subr.bf16.mxu0 %v1481_v7 }
 0x580   :  { %v739_v57 = vpop.f32.mrb[4].mxu0 }
 0x581   :  { %v744_v3 = vadd.f32 %v739_v57, %v173_v61  ;;  %v741_v6 = vpop.f32.mrb[5].mxu0 }
 0x582   :  { %v745_v9 = vadd.f32 %v741_v6, %v175_v62 }
 0x583   :  { %v746_v11 = vadd.f32 %v744_v3, %v666_v63 }
 0x584   :  { %1407 = vtanh.f32 %v745_v9 }
 0x585   :  { %vm747_vm6 = vcmp.gt.f32.partialorder %v746_v11, %v1719_v16 }
 0x586   :  { %v749_v17 = vsel %vm747_vm6, 0.0, %v746_v11  ;;  %v748_v7 = vsel %vm747_vm6, %v746_v11, 0.0 }
 0x58e   :  { %v1408_v20 = vpop.eup %1407 }
 0x58f   :  { %v752_v21 = vsub.f32 %v670_v56, %v1408_v20 }
 0x591   :  { %v753_v22 = vmul.f32 %v752_v21, %v748_v7 }
 0x593   :  { %v754_v23 = vadd.f32 %v1408_v20, %v753_v22 }
 0x595   :  { %822 = vmatmul.mubr.f32.vlgmr.msra.gmra.mrb[6].mxu0 %v754_v23 }
 0x596   :  { %1309 = vmatpush1.bf16.msra.mxu0 %v1490_v10  ;;  %905 = vmatprep.mubr.f32.mxu0 %v1413_v2  ;;  %v1414_v10 = vmov 0.0|0.0   ;;  %v187_v2 = vadd.f32 %v1710_v12, %v1714_v14 }
 0x597   :  { %1311 = vmatprep.subr.bf16.mxu0 %v1506_v15  ;;  %1338 = vmatprep.subr.bf16.mxu1 %v1414_v10  ;;  %v921_v15 = vld [vmem:[%s1911_s6] sm:$0xff] }
 0x59a   :  { %1313 = vmatpush1.bf16.msra.mxu0 %v1515_v18  ;;  %v922_v18 = vld [vmem:[%s1911_s6 + $0x8] sm:$0xff] }
 0x59b   :  { %1315 = vmatprep.subr.bf16.mxu0 %v1519_v19  ;;  %v923_v19 = vld [vmem:[%s1911_s6 + $0x10] sm:$0xff] }
 0x59e   :  { %1317 = vmatpush1.bf16.msra.mxu0 %v1541_v25  ;;  %v1339_v25 = vpack.c.bf16 %v922_v18, %v921_v15 }
 0x59f   :  { %1319 = vmatprep.subr.bf16.mxu0 %v1544_v26  ;;  %v924_v26 = vld [vmem:[%s1911_s6 + $0x18] sm:$0xff] }
 0x5a0   :  { %1340 = vmatpush3.bf16.msra.mxu1 %v1339_v25 }
 0x5a1   :  { %1341 = vmatprep.subr.bf16.mxu1 %v1414_v10 }
 0x5a2   :  { %1321 = vmatpush1.bf16.msra.mxu0 %v1566_v32  ;;  %v1342_v32 = vpack.c.bf16 %v924_v26, %v923_v19 }
 0x5a3   :  { %1323 = vmatprep.subr.bf16.mxu0 %v1569_v33  ;;  %v925_v33 = vld [vmem:[%s1911_s6 + $0x20] sm:$0xff] }
 0x5a4   :  { %1343 = vmatpush3.bf16.msra.mxu1 %v1342_v32 }
 0x5a5   :  { %1344 = vmatprep.subr.bf16.mxu1 %v1414_v10 }
 0x5a6   :  { %1325 = vmatpush1.bf16.msra.mxu0 %v1591_v39  ;;  %v926_v39 = vld [vmem:[%s1911_s6 + $0x28] sm:$0xff] }
 0x5a7   :  { %1327 = vmatprep.subr.bf16.mxu0 %v1594_v40  ;;  %v1345_v40 = vpack.c.bf16 %v926_v39, %v925_v33 }
 0x5a9   :  { %1346 = vmatpush3.bf16.msra.mxu1 %v1345_v40 }
 0x5aa   :  { %1329 = vmatpush1.bf16.msra.mxu0 %v1616_v46  ;;  %1347 = vmatprep.subr.bf16.mxu1 %v1414_v10  ;;  %v179_v46 = vadd.f32 %v1701_v4, %v1712_v13  ;;  %v927_v4 = vld [vmem:[%s1911_s6 + $0x30] sm:$0xff] }
 0x5ab   :  { %1331 = vmatprep.subr.bf16.mxu0 %v1619_v47  ;;  %v181_v47 = vadd.f32 %v1703_v5, %v1714_v14  ;;  %v928_v5 = vld [vmem:[%s1911_s6 + $0x38] sm:$0xff] }
 0x5ac   :  { %v1348_v36 = vpack.c.bf16 %v928_v5, %v927_v4 }
 0x5ae   :  { %1333 = vmatpush1.bf16.msra.mxu0 %v1641_v53  ;;  %1349 = vmatpush3.bf16.msra.mxu1 %v1348_v36 }
 0x5af   :  { %1335 = vmatprep.subr.bf16.mxu0 %v1644_v54  ;;  %v750_v54 = vmul.f32 %v1743_v31, %v749_v17  ;;  %1350 = vmatprep.subr.bf16.mxu1 %v1414_v10 }
 0x5b2   :  { %1337 = vmatpush1.bf16.msra.mxu0 %v1660_v58  ;;  %1352 = vmatpush3.bf16.msra.mxu1 %v1351_v59 }
 0x5b3   :  { %1353 = vmatprep.subr.bf16.mxu1 %v1414_v10 }
 0x5b6   :  { %1355 = vmatpush3.bf16.msra.mxu1 %v1354_v42 }
 0x5b7   :  { %1356 = vmatprep.subr.bf16.mxu1 %v1414_v10 }
 0x5ba   :  { %1358 = vmatpush3.bf16.msra.mxu1 %v1357_v45 }
 0x5bb   :  { %1359 = vmatprep.subr.bf16.mxu1 %v1414_v10 }
 0x5be   :  { %1361 = vmatpush3.bf16.msra.mxu1 %v1360_v50 }
 0x668   :  { %v823_v53 = vpop.f32.mrb[6].mxu0 }
 0x669   :  { %v828_v58 = vadd.f32 %v823_v53, %v179_v46  ;;  %v825_v0 = vpop.f32.mrb[7].mxu0 }
 0x66a   :  { %v829_v1 = vadd.f32 %v825_v0, %v181_v47 }
 0x66b   :  { %v830_v24 = vadd.f32 %v828_v58, %v750_v54 }
 0x66c   :  { %1409 = vtanh.f32 %v829_v1 }
 0x66d   :  { %vm831_vm7 = vcmp.gt.f32.partialorder %v830_v24, %v1719_v16 }
 0x66e   :  { %v833_v27 = vsel %vm831_vm7, 0.0, %v830_v24  ;;  %v832_v30 = vsel %vm831_vm7, %v830_v24, 0.0 }
 0x66f   :  { %v834_v55 = vmul.f32 %v1743_v31, %v833_v27 }
 0x676   :  { %v1410_v28 = vpop.eup %1409 }
 0x677   :  { %v836_v29 = vsub.f32 %v754_v23, %v1410_v28 }
 0x679   :  { %v837_v34 = vmul.f32 %v836_v29, %v832_v30 }
 0x67b   :  { %v838_v35 = vadd.f32 %v1410_v28, %v837_v34 }
 0x67d   :  { %906 = vmatmul.mubr.f32.vlgmr.msra.gmra.mrb[8].mxu0 %v838_v35 }
 0x750   :  { %v907_v52 = vpop.f32.mrb[8].mxu0 }
 0x751   :  { %v912_v56 = vadd.f32 %v907_v52, %v185_v51  ;;  %v909_v61 = vpop.f32.mrb[9].mxu0 }
 0x752   :  { %v913_v62 = vadd.f32 %v909_v61, %v187_v2 }
 0x753   :  { %v914_v57 = vadd.f32 %v912_v56, %v834_v55 }
 0x754   :  { %1411 = vtanh.f32 %v913_v62 }
 0x755   :  { %vm915_vm9 = vcmp.gt.f32.partialorder %v914_v57, %v1719_v16 }
 0x756   :  { %v916_v6 = vsel %vm915_vm9, %v914_v57, 0.0 }
 0x75e   :  { %v1412_v63 = vpop.eup %1411 }
 0x75f   :  { %v918_v3 = vsub.f32 %v838_v35, %v1412_v63 }
 0x761   :  { %v919_v9 = vmul.f32 %v918_v3, %v916_v6 }
 0x763   :  { %v920_v11 = vadd.f32 %v1412_v63, %v919_v9 }
 0x765   :  { %1080 = vmatmul.mubr.f32.vlgmr.msra.gmra.mrb[16].mxu1 %v920_v11 }
 0x838   :  { %v1010_v12 = vpop.f32.mrb[16].mxu1 }
 0x839   :  { %v1011_v13 = vadd.f32 %v1029_v8, %v1010_v12  ;;  %v1081_v14 = vpop.f32.mrb[17].mxu1 }
 0x83b   :  { %1014 = vst [vmem:[%s1913_s8] sm:$0xff] %v1011_v13 }

</bundles_post_ra>
